<compile_context>
chip_gen: v7x
topology: tpu7x:2x2x1
jax: 0.10.0
libtpu: 0.0.40
codegen_flags: <defaults>
</compile_context>

<pallas_src>
from functools import partial

import jax
import jax.numpy as jnp
from jax.experimental import pallas as pl
from jax.experimental.pallas import tpu as pltpu


def _round_up(a, m):
    return (a + m - 1) // m * m


def _cdiv(a, m):
    return (a + m - 1) // m


def textcnn_kernel(xcol_ref, wconv_ref, bconv_ref, maskt_ref, wfc_ref, bfc_ref,
                   out_ref, *, split):
    """One batch tile of the fused TextCNN forward.

    xcol_ref  : [TB, L_T, K_PAD]  bf16  lane-dense im2col slab (built in wrapper)
    wconv_ref : [K_PAD, F_PAD]    bf16  all conv branches packed (taps/filters zero-padded)
    bconv_ref : [1, F_PAD]        f32
    maskt_ref : [L_T-split, F_PAD] f32  0 = valid, -1e30 = partial/padded window (tail rows only)
    wfc_ref   : [F_PAD, C_PAD]    bf16  zero-padded nn.Linear weight (transposed)
    bfc_ref   : [1, C_PAD]        f32
    out_ref   : [TB, C_PAD]       f32
    """
    xcol = xcol_ref[...]                                   # [TB, L_T, K_PAD] bf16
    TB, L_T, K_PAD = xcol.shape
    F_PAD = wconv_ref.shape[1]

    # One MXU matmul for every tap of every conv branch.  The reshape merges
    # leading dims only (L_T is a multiple of 16) -> layout no-op.
    acc = jnp.dot(xcol.reshape(TB * L_T, K_PAD), wconv_ref[...],
                  preferred_element_type=jnp.float32)      # [TB*L_T, F_PAD] f32
    acc = acc.reshape(TB, L_T, F_PAD)

    # Only the 8-aligned tail of time positions can hold partial / padded
    # windows; mask just those rows, take an unmasked max over the prefix.
    tail = acc[:, split:, :] + maskt_ref[...][None, :, :]
    m = jnp.max(tail, axis=1)                              # [TB, F_PAD] f32
    if split > 0:
        m = jnp.maximum(m, jnp.max(acc[:, :split, :], axis=1))

    # bias + ReLU hoisted past the max-over-time (both monotone per filter;
    # valid because every branch has >= 1 unmasked position since L >= max_k).
    pooled = jnp.maximum(m + bconv_ref[...], 0.0)          # [TB, F_PAD] f32

    # Dropout is identity in eval mode.
    logits = jnp.dot(pooled.astype(wfc_ref.dtype), wfc_ref[...],
                     preferred_element_type=jnp.float32)   # [TB, C_PAD] f32
    out_ref[...] = logits + bfc_ref[...]


def _choose_tiling(B, L_T, K_PAD):
    """Batch tile TB (mult of 8), padded batch, and grid length."""
    B8 = _round_up(B, 8)
    row_bytes = L_T * K_PAD * 2                        # bf16 activation row
    tb_cap = max(8, min(512, (4 * 1024 * 1024 // row_bytes) // 8 * 8))
    # >= 2 grid steps whenever the batch can be split (v7x megacore).
    min_steps = 2 if B8 >= 16 else 1
    n_steps = max(min_steps, _cdiv(B8, tb_cap))
    TB = _round_up(_cdiv(B8, n_steps), 8)
    return TB, TB * n_steps, n_steps


def _build_im2col(tokens, emb_table, L_T, max_k, K_PAD):
    """One fused gather straight into the lane-dense [B, L_T, K_PAD] bf16 slab."""
    B, L = tokens.shape
    D = emb_table.shape[1]
    tok = jnp.pad(tokens, ((0, 0), (0, L_T + max_k - 1 - L)))   # time pad (id 0, masked later)
    win = jnp.arange(L_T)[:, None] + jnp.arange(max_k)[None, :]  # [L_T, max_k]
    tok_col = tok[:, win]                                        # [B, L_T, max_k] token im2col
    x = jnp.take(emb_table.astype(jnp.bfloat16), tok_col, axis=0)  # [B, L_T, max_k, D]
    x = x.reshape(B, L_T, max_k * D)
    if K_PAD > max_k * D:
        x = jnp.pad(x, ((0, 0), (0, 0), (0, K_PAD - max_k * D)))
    return x


def _pack_params(conv_ws, conv_bs, w_fc, b_fc, kernel_sizes, L, L_T, split,
                 K_PAD, F_PAD, C_PAD):
    """Pack per-branch conv params into lane-dense weight/bias/mask arrays."""
    D = conv_ws[0].shape[1]
    F = conv_ws[0].shape[2]
    nk = len(kernel_sizes)
    max_k = max(kernel_sizes)
    C = w_fc.shape[1]
    assert nk * F <= F_PAD, "packed filter width exceeds F_PAD"
    assert C <= C_PAD, "num_classes exceeds C_PAD"
    assert max_k * D <= K_PAD, "packed tap width exceeds K_PAD"

    Wc = jnp.zeros((max_k * D, F_PAD), jnp.float32)
    bc = jnp.zeros((1, F_PAD), jnp.float32)
    tail_len = L_T - split
    maskt = jnp.zeros((tail_len, F_PAD), jnp.float32)
    tail_pos = split + jnp.arange(tail_len)
    for i, (k, w, b) in enumerate(zip(kernel_sizes, conv_ws, conv_bs)):
        Wc = Wc.at[:k * D, i * F:(i + 1) * F].set(w.reshape(k * D, F))
        bc = bc.at[0, i * F:(i + 1) * F].set(b)
        invalid = (tail_pos > (L - k))[:, None]          # partial / time-padded windows
        maskt = maskt.at[:, i * F:(i + 1) * F].set(jnp.where(invalid, -1e30, 0.0))
    if K_PAD > max_k * D:
        Wc = jnp.pad(Wc, ((0, K_PAD - max_k * D), (0, 0)))

    Wfc = jnp.zeros((F_PAD, C_PAD), jnp.float32).at[:nk * F, :C].set(w_fc)
    bfc = jnp.zeros((1, C_PAD), jnp.float32).at[0, :C].set(b_fc)
    return Wc, bc, maskt, Wfc, bfc


def textcnn_forward(tokens, emb_table, conv_ws, conv_bs, w_fc, b_fc, kernel_sizes):
    B, L = tokens.shape
    D = emb_table.shape[1]
    F = conv_ws[0].shape[2]
    nk = len(kernel_sizes)
    C = w_fc.shape[1]
    max_k = max(kernel_sizes)
    assert L >= max_k, "seq_len must be >= max kernel size (matches PyTorch conv validity)"

    K_PAD = _round_up(max_k * D, 128)
    F_PAD = _round_up(nk * F, 128)
    C_PAD = _round_up(C, 128)

    # Time positions padded to a multiple of 16 (bf16 sublane packing) so all
    # in-kernel reshapes are layout no-ops; padded positions are masked.
    L_T = _round_up(L, 16)
    first_partial = L - max_k + 1          # first position that can be a partial window
    split = max(0, (first_partial // 8) * 8)

    TB, B_pad, n_steps = _choose_tiling(B, L_T, K_PAD)

    # Lane-dense im2col slab (one fused gather; no [B, L, D] intermediate).
    xcol = _build_im2col(tokens, emb_table, L_T, max_k, K_PAD)      # [B, L_T, K_PAD] bf16
    if B_pad != B:
        xcol = jnp.pad(xcol, ((0, B_pad - B), (0, 0), (0, 0)))

    Wc, bc, maskt, Wfc, bfc = _pack_params(conv_ws, conv_bs, w_fc, b_fc,
                                           kernel_sizes, L, L_T, split,
                                           K_PAD, F_PAD, C_PAD)
    Wc = Wc.astype(jnp.bfloat16)
    Wfc = Wfc.astype(jnp.bfloat16)

    kernel = partial(textcnn_kernel, split=split)

    out = pl.pallas_call(
        kernel,
        out_shape=jax.ShapeDtypeStruct((B_pad, C_PAD), jnp.float32),
        grid=(n_steps,),
        in_specs=[
            pl.BlockSpec((TB, L_T, K_PAD), lambda i: (i, 0, 0)),      # activation slab tile
            pl.BlockSpec((K_PAD, F_PAD), lambda i: (0, 0)),           # packed conv W (resident)
            pl.BlockSpec((1, F_PAD), lambda i: (0, 0)),               # conv bias
            pl.BlockSpec((L_T - split, F_PAD), lambda i: (0, 0)),     # tail validity mask
            pl.BlockSpec((F_PAD, C_PAD), lambda i: (0, 0)),           # fc W (resident)
            pl.BlockSpec((1, C_PAD), lambda i: (0, 0)),               # fc bias
        ],
        out_specs=pl.BlockSpec((TB, C_PAD), lambda i: (i, 0)),        # lane-dense store
        compiler_params=pltpu.CompilerParams(
            dimension_semantics=("parallel",),     # batch axis megacore-splittable
            vmem_limit_bytes=48 * 1024 * 1024,     # under v7x's 64 MiB physical VMEM
        ),
    )(xcol, Wc, bc, maskt, Wfc, bfc)

    return out[:B, :C]


def textcnn_reference(tokens, emb_table, conv_ws, conv_bs, w_fc, b_fc, kernel_sizes):
    """Pure-JAX f32 reference mirroring the PyTorch forward (eval mode)."""
    x = jnp.take(emb_table, tokens, axis=0).astype(jnp.float32)  # [B, L, D]
    L = x.shape[1]
    pooled = []
    for (w, b), k in zip(zip(conv_ws, conv_bs), kernel_sizes):
        T = L - k + 1
        acc = jnp.zeros((x.shape[0], T, w.shape[-1]), jnp.float32)
        for j in range(k):
            acc = acc + jnp.einsum("btd,df->btf", x[:, j:j + T, :], w[j])
        conv = jax.nn.relu(acc + b[None, None, :])
        pooled.append(jnp.max(conv, axis=1))
    feat = jnp.concatenate(pooled, axis=-1)
    return feat @ w_fc + b_fc[None, :]


if __name__ == "__main__":
    # Small, deterministic configuration consistent with the module.
    vocab_size = 50
    embed_dim = 32
    num_classes = 8
    kernel_sizes = (2, 3, 4)
    num_filters = 16
    batch = 2
    seq_len = 16

    key = jax.random.PRNGKey(0)
    keys = jax.random.split(key, 4 + 2 * len(kernel_sizes))

    tokens = jax.random.randint(keys[0], (batch, seq_len), 0, vocab_size,
                                dtype=jnp.int32)
    emb_table = 0.1 * jax.random.normal(keys[1], (vocab_size, embed_dim),
                                        jnp.float32)

    conv_ws, conv_bs = [], []
    for i, k in enumerate(kernel_sizes):
        # PyTorch Conv2d weight [F, 1, k, D] -> stored here as [k, D, F].
        conv_ws.append(0.1 * jax.random.normal(
            keys[2 + 2 * i], (k, embed_dim, num_filters), jnp.float32))
        conv_bs.append(0.1 * jax.random.normal(
            keys[3 + 2 * i], (num_filters,), jnp.float32))

    # nn.Linear weight [C, F*nk] -> stored transposed as [F*nk, C].
    w_fc = 0.1 * jax.random.normal(
        keys[-2], (num_filters * len(kernel_sizes), num_classes), jnp.float32)
    b_fc = 0.1 * jax.random.normal(keys[-1], (num_classes,), jnp.float32)

    out = textcnn_forward(tokens, emb_table, conv_ws, conv_bs, w_fc, b_fc,
                          kernel_sizes)
    out = jax.block_until_ready(out)

    ref = textcnn_reference(tokens, emb_table, conv_ws, conv_bs, w_fc, b_fc,
                            kernel_sizes)
    assert out.shape == (batch, num_classes)
    # Kernel uses bf16 MXU inputs with f32 accumulation; reference is pure f32.
    assert jnp.allclose(out, ref, atol=2e-2, rtol=2e-2)

    print("KERNEL_OK")
</pallas_src>

<mosaic_0001>
module attributes {stable_mosaic.version = 11 : i64} {
  func.func @textcnn_kernel(%arg0: i32, %arg1: memref<8x16x128xbf16, #tpu.memory_space<vmem>>, %arg2: memref<128x128xbf16, #tpu.memory_space<vmem>>, %arg3: memref<1x128xf32, #tpu.memory_space<vmem>>, %arg4: memref<8x128xf32, #tpu.memory_space<vmem>>, %arg5: memref<128x128xbf16, #tpu.memory_space<vmem>>, %arg6: memref<1x128xf32, #tpu.memory_space<vmem>>, %arg7: memref<8x128xf32, #tpu.memory_space<vmem>>) attributes {dimension_semantics = [#tpu.dimension_semantics<parallel>], iteration_bounds = array<i64: 1>, scalar_prefetch = 0 : i64, scratch_operands = 0 : i64, tpu.core_type = #tpu.core_type<tc>, window_params = [{transform_indices = @transform_0, window_bounds = array<i64: 8, 16, 128>}, {pipeline_mode = #tpu.pipeline_mode<synchronous>, transform_indices = @transform_1, window_bounds = array<i64: 128, 128>}, {pipeline_mode = #tpu.pipeline_mode<synchronous>, transform_indices = @transform_2, window_bounds = array<i64: 1, 128>}, {pipeline_mode = #tpu.pipeline_mode<synchronous>, transform_indices = @transform_3, window_bounds = array<i64: 8, 128>}, {pipeline_mode = #tpu.pipeline_mode<synchronous>, transform_indices = @transform_4, window_bounds = array<i64: 128, 128>}, {pipeline_mode = #tpu.pipeline_mode<synchronous>, transform_indices = @transform_5, window_bounds = array<i64: 1, 128>}, {transform_indices = @transform_6, window_bounds = array<i64: 8, 128>}]} {
    %c0 = arith.constant 0 : index
    %c0_0 = arith.constant 0 : index
    %c0_1 = arith.constant 0 : index
    %0 = vector.load %arg1[%c0, %c0_0, %c0_1] : memref<8x16x128xbf16, #tpu.memory_space<vmem>>, vector<8x16x128xbf16>
    %1 = vector.shape_cast %0 : vector<8x16x128xbf16> to vector<128x128xbf16>
    %c0_2 = arith.constant 0 : index
    %c0_3 = arith.constant 0 : index
    %2 = vector.load %arg2[%c0_2, %c0_3] : memref<128x128xbf16, #tpu.memory_space<vmem>>, vector<128x128xbf16>
    %cst = arith.constant dense<0.000000e+00> : vector<128x128xf32>
    %3 = tpu.matmul %1, %2, %cst {dimension_numbers = #tpu.dot_dimension_numbers<[1], [0], [0], [1], [0, 0, 1, 1], [], []>} : vector<128x128xbf16>, vector<128x128xbf16>, vector<128x128xf32> -> vector<128x128xf32>
    %4 = vector.shape_cast %3 : vector<128x128xf32> to vector<8x16x128xf32>
    %5 = vector.extract_strided_slice %4 {offsets = [0, 8, 0], sizes = [8, 8, 128], strides = [1, 1, 1]} : vector<8x16x128xf32> to vector<8x8x128xf32>
    %c0_4 = arith.constant 0 : index
    %c0_5 = arith.constant 0 : index
    %6 = vector.load %arg4[%c0_4, %c0_5] : memref<8x128xf32, #tpu.memory_space<vmem>>, vector<8x128xf32>
    %7 = vector.shape_cast %6 : vector<8x128xf32> to vector<1x8x128xf32>
    %8 = vector.broadcast %7 : vector<1x8x128xf32> to vector<8x8x128xf32>
    %9 = arith.addf %5, %8 : vector<8x8x128xf32>
    %cst_6 = arith.constant dense<0xFF800000> : vector<8x128xf32>
    %10 = vector.multi_reduction <maximumf>, %9, %cst_6 [1] : vector<8x8x128xf32> to vector<8x128xf32>
    %11 = vector.extract_strided_slice %4 {offsets = [0, 0, 0], sizes = [8, 8, 128], strides = [1, 1, 1]} : vector<8x16x128xf32> to vector<8x8x128xf32>
    %cst_7 = arith.constant dense<0xFF800000> : vector<8x128xf32>
    %12 = vector.multi_reduction <maximumf>, %11, %cst_7 [1] : vector<8x8x128xf32> to vector<8x128xf32>
    %13 = arith.maximumf %10, %12 : vector<8x128xf32>
    %c0_8 = arith.constant 0 : index
    %c0_9 = arith.constant 0 : index
    %14 = vector.load %arg3[%c0_8, %c0_9] : memref<1x128xf32, #tpu.memory_space<vmem>>, vector<1x128xf32>
    %15 = vector.broadcast %14 : vector<1x128xf32> to vector<8x128xf32>
    %16 = arith.addf %13, %15 : vector<8x128xf32>
    %cst_10 = arith.constant 0.000000e+00 : f32
    %17 = vector.broadcast %cst_10 : f32 to vector<8x128xf32>
    %18 = arith.maximumf %16, %17 : vector<8x128xf32>
    %19 = arith.truncf %18 : vector<8x128xf32> to vector<8x128xbf16>
    %c0_11 = arith.constant 0 : index
    %c0_12 = arith.constant 0 : index
    %20 = vector.load %arg5[%c0_11, %c0_12] : memref<128x128xbf16, #tpu.memory_space<vmem>>, vector<128x128xbf16>
    %cst_13 = arith.constant dense<0.000000e+00> : vector<8x128xf32>
    %21 = tpu.matmul %19, %20, %cst_13 {dimension_numbers = #tpu.dot_dimension_numbers<[1], [0], [0], [1], [0, 0, 1, 1], [], []>} : vector<8x128xbf16>, vector<128x128xbf16>, vector<8x128xf32> -> vector<8x128xf32>
    %c0_14 = arith.constant 0 : index
    %c0_15 = arith.constant 0 : index
    %22 = vector.load %arg6[%c0_14, %c0_15] : memref<1x128xf32, #tpu.memory_space<vmem>>, vector<1x128xf32>
    %23 = vector.broadcast %22 : vector<1x128xf32> to vector<8x128xf32>
    %24 = arith.addf %21, %23 : vector<8x128xf32>
    %c0_16 = arith.constant 0 : index
    %c0_17 = arith.constant 0 : index
    %25 = vector.load %arg7[%c0_16, %c0_17] : memref<8x128xf32, #tpu.memory_space<vmem>>, vector<8x128xf32>
    tpu.vector_store %arg7[%c0_16, %c0_17], %24 {strides = array<i32>} : memref<8x128xf32, #tpu.memory_space<vmem>>, vector<8x128xf32>,
    return
  }
  func.func @transform_0(%arg0: i32) -> (i32, i32, i32) {
    %c0_i32 = arith.constant 0 : i32
    %c0_i32_0 = arith.constant 0 : i32
    %c0_i32_1 = arith.constant 0 : i32
    return %arg0, %c0_i32, %c0_i32_0 : i32, i32, i32
  }
  func.func @transform_1(%arg0: i32) -> (i32, i32) {
    %c0_i32 = arith.constant 0 : i32
    %c0_i32_0 = arith.constant 0 : i32
    %c0_i32_1 = arith.constant 0 : i32
    return %c0_i32, %c0_i32_0 : i32, i32
  }
  func.func @transform_2(%arg0: i32) -> (i32, i32) {
    %c0_i32 = arith.constant 0 : i32
    %c0_i32_0 = arith.constant 0 : i32
    %c0_i32_1 = arith.constant 0 : i32
    return %c0_i32, %c0_i32_0 : i32, i32
  }
  func.func @transform_3(%arg0: i32) -> (i32, i32) {
    %c0_i32 = arith.constant 0 : i32
    %c0_i32_0 = arith.constant 0 : i32
    %c0_i32_1 = arith.constant 0 : i32
    return %c0_i32, %c0_i32_0 : i32, i32
  }
  func.func @transform_4(%arg0: i32) -> (i32, i32) {
    %c0_i32 = arith.constant 0 : i32
    %c0_i32_0 = arith.constant 0 : i32
    %c0_i32_1 = arith.constant 0 : i32
    return %c0_i32, %c0_i32_0 : i32, i32
  }
  func.func @transform_5(%arg0: i32) -> (i32, i32) {
    %c0_i32 = arith.constant 0 : i32
    %c0_i32_0 = arith.constant 0 : i32
    %c0_i32_1 = arith.constant 0 : i32
    return %c0_i32, %c0_i32_0 : i32, i32
  }
  func.func @transform_6(%arg0: i32) -> (i32, i32) {
    %c0_i32 = arith.constant 0 : i32
    %c0_i32_0 = arith.constant 0 : i32
    return %arg0, %c0_i32 : i32, i32
  }
}

</mosaic_0001>

<bundles_post_ra>
// kernel: tpu_custom_call.1
= control target key start
LH: loop header
LB: loop body
LE: loop exit
PB: predicated region body
PF: predicated region fallthrough
CT: control target
= control target key end

     0   :  { %11 = vsyncpa [#allocation3], 0  ;;  %s968_s0 = inlined_call_operand.hbm [shape: bf16[8,16,128], index: 0, kind: input, shape index: {}]   ;;  %s969_s1 = inlined_call_operand.hbm [shape: bf16[128,128], index: 1, kind: input, shape index: {}]   ;;  %s970_s2 = inlined_call_operand.vmem [shape: f32[1,128], index: 2, kind: input, shape index: {}]   ;;  %s971_s3 = inlined_call_operand.vmem [shape: f32[8,128], index: 3, kind: input, shape index: {}]   ;;  %s972_s4 = inlined_call_operand.hbm [shape: bf16[128,128], index: 4, kind: input, shape index: {}]   ;;  %s973_s5 = inlined_call_operand.vmem [shape: f32[1,128], index: 5, kind: input, shape index: {}]   ;;  %s974_s6 = inlined_call_operand.hbm [shape: f32[8,128], index: 6, kind: output, shape index: {}]  }
   0x1   :  { %12 = vsyncpa [#allocation6], 0 }
   0x2   :  { %13 = vsyncpa [#allocation4], 0  ;;  %s831_s21 = smov [#allocation5]   ;;  %s832_s23 = smov [#allocation2]  }
   0x3   :  { %s31_s22 = sshll.u32 %s831_s21, 4  ;;  %s19_s24 = sshll.u32 %s832_s23, 4  ;;  %s32_s22 = int_to_ptr.vmem [resolvable:$true] %s31_s22  ;;  %s874_s24 = int_to_ptr.vmem [resolvable:$true] %s19_s24 }
   0x4   :  { %s737_s27 = scalar_lea.hbm %s969_s1, 1024 }
   0x5   :  { %p738_p0 = scmp.ne.s32.totalorder %s969_s1, %s737_s27  ;;  %p741_p1 = scmp.lt.u32.totalorder %s737_s27, %s969_s1 }
   0x7   :  { %p743_p2 = pnand %p741_p1, %p738_p0 }
   0x9   :  { %746 = shalt.err (!%p743_p2)
}
   0xa   :  { %s747_s8 = scalar_lea.vmem %s32_s22, 1024  ;;  %p752_p4 = scmp.lt.s32.totalorder %s32_s22, %s32_s22 }
   0xb   :  { %p748_p3 = scmp.ne.s32.totalorder %s32_s22, %s747_s8  ;;  %p753_p5 = scmp.lt.s32.totalorder %s747_s8, %s747_s8 }
   0xd   :  { %p754_p6 = por %p753_p5, %p752_p4 }
   0xf   :  { %p755_p7 = pnand %p754_p6, %p748_p3 }
  0x11   :  { %758 = shalt.err (!%p755_p7)
}
  0x12   :  { %s833_s9 = smov 64   ;;  %s834_s10 = smov 4  }
  0x13   :  { %37 = dma.hbm_to_vmem [thread:$0]  %s969_s1, 1024, %s32_s22, [#allocation6], %s833_s9, %s833_s9, %s834_s10  }
  0x14   :  { %s759_s15 = scalar_lea.hbm %s968_s0, 1024 }
  0x15   :  { %p760_p8 = scmp.ne.s32.totalorder %s968_s0, %s759_s15  ;;  %p763_p9 = scmp.lt.u32.totalorder %s759_s15, %s968_s0 }
  0x17   :  { %p765_p10 = pnand %p763_p9, %p760_p8 }
  0x19   :  { %768 = shalt.err (!%p765_p10)
}
  0x1a   :  { %s769_s20 = scalar_lea.vmem %s874_s24, 1024  ;;  %p774_p12 = scmp.lt.s32.totalorder %s874_s24, %s874_s24 }
  0x1b   :  { %p770_p11 = scmp.ne.s32.totalorder %s874_s24, %s769_s20  ;;  %p775_p13 = scmp.lt.s32.totalorder %s769_s20, %s769_s20 }
  0x1d   :  { %p776_p0 = por %p775_p13, %p774_p12 }
  0x1f   :  { %p777_p1 = pnand %p776_p0, %p770_p11 }
  0x21   :  { %780 = shalt.err (!%p777_p1)
}
  0x22   :  { %25 = dma.hbm_to_vmem [thread:$0]  %s968_s0, 1024, %s874_s24, [#allocation3], %s833_s9, %s833_s9, %s834_s10  }
  0x23   :  { %s835_s22 = smov [#allocation7]   ;;  %s781_s27 = scalar_lea.hbm %s972_s4, 1024 }
  0x24   :  { %s47_s23 = sshll.u32 %s835_s22, 4  ;;  %p782_p2 = scmp.ne.s32.totalorder %s972_s4, %s781_s27  ;;  %s48_s23 = int_to_ptr.vmem [resolvable:$true] %s47_s23 }
  0x25   :  { %p785_p3 = scmp.lt.u32.totalorder %s781_s27, %s972_s4 }
  0x27   :  { %p787_p4 = pnand %p785_p3, %p782_p2 }
  0x29   :  { %790 = shalt.err (!%p787_p4)
}
  0x2a   :  { %s791_s8 = scalar_lea.vmem %s48_s23, 1024  ;;  %p796_p6 = scmp.lt.s32.totalorder %s48_s23, %s48_s23 }
  0x2b   :  { %p792_p5 = scmp.ne.s32.totalorder %s48_s23, %s791_s8  ;;  %p797_p7 = scmp.lt.s32.totalorder %s791_s8, %s791_s8 }
  0x2d   :  { %p798_p8 = por %p797_p7, %p796_p6 }
  0x2f   :  { %p799_p9 = pnand %p798_p8, %p792_p5 }
  0x31   :  { %802 = shalt.err (!%p799_p9)
}
  0x32   :  { %53 = dma.hbm_to_vmem [thread:$0]  %s972_s4, 1024, %s48_s23, [#allocation6], %s833_s9, %s833_s9, %s834_s10  }
  0x33   :  { %825 = dma.done.wait [#allocation3], 1024  }
  0x34   :  { %826 = vsyncadd [#allocation3], 4294966272 }
  0x35   :  { %827 = dma.done.wait [#allocation6], 2048  }
  0x36   :  { %828 = vsyncadd [#allocation6], 4294965248  ;;  %v713_v0 = vld [vmem:[#allocation5] sm:$0xff]   ;;  %v714_v1 = vld [vmem:[#allocation5 + $0x8] sm:$0xff]   ;;  %v836_v17 = vmov 0.0   ;;  %vm837_vm0 = vmmov 0  }
  0x37   :  { %653 = vmatprep.subr.bf16.mxu0 %v713_v0  ;;  %v715_v2 = vld [vmem:[#allocation5 + $0x10] sm:$0xff]   ;;  %v716_v3 = vld [vmem:[#allocation5 + $0x18] sm:$0xff]   ;;  %v721_v4 = vld [vmem:[#allocation2] sm:$0xff]   ;;  %685 = vmatprep.subr.bf16.mxu1 %v836_v17  ;;  %vm475_vm1 = vcmask 1041409   ;;  %vm478_vm2 = vcmask 1042434   ;;  %vm481_vm3 = vcmask 1043459  }
  0x38   :  { %654 = vmatpush3.bf16.msra.mxu0 %v713_v0  ;;  %669 = vmatprep.mubr.bf16.mxu0 %v721_v4  ;;  %v717_v5 = vld [vmem:[#allocation5 + $0x20] sm:$0xff]   ;;  %v718_v6 = vld [vmem:[#allocation5 + $0x28] sm:$0xff]   ;;  %v719_v7 = vld [vmem:[#allocation5 + $0x30] sm:$0xff]   ;;  %vm484_vm4 = vcmask 1044484   ;;  %vm487_vm5 = vcmask 1045509   ;;  %vm490_vm6 = vcmask 1046534  }
  0x39   :  { %655 = vmatprep.subr.bf16.mxu0 %v714_v1  ;;  %v720_v8 = vld [vmem:[#allocation5 + $0x38] sm:$0xff]   ;;  %v722_v9 = vld [vmem:[#allocation2 + $0x8] sm:$0xff]   ;;  %v723_v10 = vld [vmem:[#allocation2 + $0x10] sm:$0xff]   ;;  %701 = vmatprep.mubr.msk.bf16.mxu1 %vm837_vm0, %v836_v17  ;;  %vm493_vm7 = vcmask 1047559   ;;  %s838_s12 = smov [#allocation8]  }
  0x3a   :  { %v724_v11 = vld [vmem:[#allocation2 + $0x18] sm:$0xff]   ;;  %v725_v12 = vld [vmem:[#allocation2 + $0x20] sm:$0xff]   ;;  %v726_v13 = vld [vmem:[#allocation2 + $0x28] sm:$0xff]   ;;  %s592_s13 = sshll.u32 %s838_s12, 4  ;;  %s593_s13 = int_to_ptr.vmem [resolvable:$true] %s592_s13 }
  0x3b   :  { %v727_v14 = vld [vmem:[#allocation2 + $0x30] sm:$0xff]   ;;  %v728_v15 = vld [vmem:[#allocation2 + $0x38] sm:$0xff]   ;;  %v729_v16 = vld [vmem:[#allocation7] sm:$0xff]   ;;  %s803_s14 = scalar_lea.vmem %s593_s13, 128  ;;  %p808_p11 = scmp.lt.s32.totalorder %s593_s13, %s593_s13 }
  0x3c   :  { %656 = vmatpush3.bf16.msra.mxu0 %v714_v1  ;;  %686 = vmatpush3.bf16.msra.mxu1 %v729_v16  ;;  %v730_v18 = vld [vmem:[#allocation7 + $0x8] sm:$0xff]   ;;  %v731_v19 = vld [vmem:[#allocation7 + $0x10] sm:$0xff]   ;;  %v732_v20 = vld [vmem:[#allocation7 + $0x18] sm:$0xff]   ;;  %p804_p10 = scmp.ne.s32.totalorder %s593_s13, %s803_s14  ;;  %p809_p12 = scmp.lt.s32.totalorder %s803_s14, %s803_s14 }
  0x3d   :  { %657 = vmatprep.subr.bf16.mxu0 %v715_v2  ;;  %687 = vmatprep.subr.bf16.mxu1 %v836_v17  ;;  %v733_v21 = vld [vmem:[#allocation7 + $0x20] sm:$0xff]   ;;  %v734_v22 = vld [vmem:[#allocation7 + $0x28] sm:$0xff]   ;;  %v735_v23 = vld [vmem:[#allocation7 + $0x30] sm:$0xff]  }
  0x3e   :  { %v736_v24 = vld [vmem:[#allocation7 + $0x38] sm:$0xff]   ;;  %v929_v26 = vld [vmem:[%s971_s3] sm:$0xff]  ;;  %p810_p13 = por %p809_p12, %p808_p11 }
  0x40   :  { %658 = vmatpush3.bf16.msra.mxu0 %v715_v2  ;;  %688 = vmatpush3.bf16.msra.mxu1 %v730_v18  ;;  %p811_p0 = pnand %p810_p13, %p804_p10 }
  0x41   :  { %659 = vmatprep.subr.bf16.mxu0 %v716_v3  ;;  %689 = vmatprep.subr.bf16.mxu1 %v836_v17 }
  0x44   :  { %660 = vmatpush3.bf16.msra.mxu0 %v716_v3  ;;  %690 = vmatpush3.bf16.msra.mxu1 %v731_v19 }
  0x45   :  { %661 = vmatprep.subr.bf16.mxu0 %v717_v5  ;;  %691 = vmatprep.subr.bf16.mxu1 %v836_v17 }
  0x48   :  { %662 = vmatpush3.bf16.msra.mxu0 %v717_v5  ;;  %692 = vmatpush3.bf16.msra.mxu1 %v732_v20 }
  0x49   :  { %663 = vmatprep.subr.bf16.mxu0 %v718_v6  ;;  %693 = vmatprep.subr.bf16.mxu1 %v836_v17 }
  0x4c   :  { %664 = vmatpush3.bf16.msra.mxu0 %v718_v6  ;;  %694 = vmatpush3.bf16.msra.mxu1 %v733_v21 }
  0x4d   :  { %665 = vmatprep.subr.bf16.mxu0 %v719_v7  ;;  %695 = vmatprep.subr.bf16.mxu1 %v836_v17 }
  0x50   :  { %666 = vmatpush3.bf16.msra.mxu0 %v719_v7  ;;  %696 = vmatpush3.bf16.msra.mxu1 %v734_v22  ;;  %v938_v7 = vld [vmem:[%s970_s2] ss:$0 sm:$0xff] }
  0x51   :  { %667 = vmatprep.subr.bf16.mxu0 %v720_v8  ;;  %697 = vmatprep.subr.bf16.mxu1 %v836_v17 }
  0x54   :  { %668 = vmatpush3.bf16.msra.mxu0 %v720_v8  ;;  %698 = vmatpush3.bf16.msra.mxu1 %v735_v23 }
  0x55   :  { %699 = vmatprep.subr.bf16.mxu1 %v836_v17 }
  0x57   :  { %670 = vmatmul.mubr.bf16.vlgmr.msra.gmra.mrb[0].mxu0 %v722_v9 }
  0x58   :  { %673 = vmatprep.mubr.bf16.mxu0 %v723_v10  ;;  %700 = vmatpush3.bf16.msra.mxu1 %v736_v24 }
  0x5f   :  { %674 = vmatmul.mubr.bf16.gmra.mrb[4].mxu0 %v724_v11 }
  0x60   :  { %677 = vmatprep.mubr.bf16.mxu0 %v725_v12 }
  0x67   :  { %678 = vmatmul.mubr.bf16.gmra.mrb[8].mxu0 %v726_v13 }
  0x68   :  { %681 = vmatprep.mubr.bf16.mxu0 %v727_v14 }
  0x6f   :  { %682 = vmatmul.mubr.bf16.gmra.mrb[12].mxu0 %v728_v15 }
 0x12a   :  { %v671_v25 = vpop.f32.mrb[0].mxu0 }
 0x12b   :  { %v354_v27 = vrot.slane %v671_v25, 4  ;;  %v228_v28 = vpop.f32.mrb[1].mxu0 }
 0x12c   :  { %v348_v29 = vrot.slane %v228_v28, 4  ;;  %v672_v30 = vpop.f32.mrb[2].mxu0 }
 0x12d   :  { %v355_v31 = vmax.f32 %v671_v25, %v354_v27  ;;  %v293_v32 = vadd.f32 %v672_v30, %v929_v26  ;;  %v231_v33 = vpop.f32.mrb[3].mxu0 }
 0x12e   :  { %v349_v34 = vmax.f32 %v228_v28, %v348_v29  ;;  %v292_v35 = vadd.f32 %v929_v26, %v231_v33 }
 0x12f   :  { %v356_v36 = vrot.slane %v355_v31, 2  ;;  %v306_v37 = vrot.slane %v293_v32, 4 }
 0x130   :  { %v350_v38 = vrot.slane %v349_v34, 2  ;;  %v300_v39 = vrot.slane %v292_v35, 4 }
 0x131   :  { %v357_v40 = vmax.f32 %v355_v31, %v356_v36  ;;  %v307_v41 = vmax.f32 %v293_v32, %v306_v37 }
 0x132   :  { %v351_v42 = vmax.f32 %v349_v34, %v350_v38  ;;  %v301_v43 = vmax.f32 %v292_v35, %v300_v39  ;;  %v675_v44 = vpop.f32.mrb[4].mxu0 }
 0x133   :  { %v308_v45 = vrot.slane %v307_v41, 2  ;;  %v366_v46 = vrot.slane %v675_v44, 4  ;;  %v244_v47 = vpop.f32.mrb[5].mxu0  ;;  %v358_v51 = vrot.slane %v357_v40, 1 }
 0x134   :  { %v302_v48 = vrot.slane %v301_v43, 2  ;;  %v360_v49 = vrot.slane %v244_v47, 4  ;;  %v676_v50 = vpop.f32.mrb[6].mxu0  ;;  %v352_v56 = vrot.slane %v351_v42, 1 }
 0x135   :  { %v309_v52 = vmax.f32 %v307_v41, %v308_v45  ;;  %v367_v53 = vmax.f32 %v675_v44, %v366_v46  ;;  %v295_v54 = vadd.f32 %v676_v50, %v929_v26  ;;  %v247_v55 = vpop.f32.mrb[7].mxu0  ;;  %v359_v2 = vmax.f32 %v357_v40, %v358_v51 }
 0x136   :  { %v303_v57 = vmax.f32 %v301_v43, %v302_v48  ;;  %v361_v58 = vmax.f32 %v244_v47, %v360_v49  ;;  %v294_v59 = vadd.f32 %v929_v26, %v247_v55  ;;  %v353_v6 = vmax.f32 %v351_v42, %v352_v56 }
 0x137   :  { %v310_v60 = vrot.slane %v309_v52, 1  ;;  %v368_v61 = vrot.slane %v367_v53, 2  ;;  %v318_v62 = vrot.slane %v295_v54, 4 }
 0x138   :  { %v304_v63 = vrot.slane %v303_v57, 1  ;;  %v362_v0 = vrot.slane %v361_v58, 2  ;;  %v312_v1 = vrot.slane %v294_v59, 4 }
 0x139   :  { %v311_v3 = vmax.f32 %v309_v52, %v310_v60  ;;  %v369_v4 = vmax.f32 %v367_v53, %v368_v61  ;;  %v319_v5 = vmax.f32 %v295_v54, %v318_v62 }
 0x13a   :  { %v305_v8 = vmax.f32 %v303_v57, %v304_v63  ;;  %v363_v9 = vmax.f32 %v361_v58, %v362_v0  ;;  %v313_v10 = vmax.f32 %v294_v59, %v312_v1  ;;  %v679_v11 = vpop.f32.mrb[8].mxu0 }
 0x13b   :  { %v397_v12 = vmax.f32 %v311_v3, %v359_v2  ;;  %v370_v13 = vrot.slane %v369_v4, 1  ;;  %v320_v14 = vrot.slane %v319_v5, 2  ;;  %v378_v15 = vrot.slane %v679_v11, 4  ;;  %v260_v16 = vpop.f32.mrb[9].mxu0 }
 0x13c   :  { %v396_v17 = vmax.f32 %v305_v8, %v353_v6  ;;  %v364_v18 = vrot.slane %v363_v9, 1  ;;  %v314_v19 = vrot.slane %v313_v10, 2  ;;  %v372_v20 = vrot.slane %v260_v16, 4  ;;  %v680_v21 = vpop.f32.mrb[10].mxu0 }
 0x13d   :  { %v412_v22 = vadd.f32 %v938_v7, %v397_v12  ;;  %v371_v23 = vmax.f32 %v369_v4, %v370_v13  ;;  %v321_v24 = vmax.f32 %v319_v5, %v320_v14  ;;  %v379_v25 = vmax.f32 %v679_v11, %v378_v15  ;;  %v263_v27 = vpop.f32.mrb[11].mxu0 }
 0x13e   :  { %v411_v28 = vadd.f32 %v938_v7, %v396_v17  ;;  %v365_v29 = vmax.f32 %v363_v9, %v364_v18  ;;  %v315_v30 = vmax.f32 %v313_v10, %v314_v19  ;;  %v373_v31 = vmax.f32 %v260_v16, %v372_v20 }
 0x13f   :  { %v420_v32 = vmax.f32 %v412_v22, 0.0  ;;  %v322_v33 = vrot.slane %v321_v24, 1  ;;  %v380_v34 = vrot.slane %v379_v25, 2  ;;  %v297_v35 = vadd.f32 %v680_v21, %v929_v26 }
 0x140   :  { %v419_v36 = vmax.f32 %v411_v28, 0.0  ;;  %v316_v37 = vrot.slane %v315_v30, 1  ;;  %v374_v38 = vrot.slane %v373_v31, 2  ;;  %v296_v39 = vadd.f32 %v929_v26, %v263_v27 }
 0x141   :  { %v428_v40 = vpack.c.bf16 %v420_v32, %v420_v32  ;;  %v323_v41 = vmax.f32 %v321_v24, %v322_v33  ;;  %v381_v42 = vmax.f32 %v379_v25, %v380_v34  ;;  %v330_v43 = vrot.slane %v297_v35, 4 }
 0x142   :  { %v427_v44 = vpack.c.bf16 %v419_v36, %v419_v36  ;;  %v317_v45 = vmax.f32 %v315_v30, %v316_v37  ;;  %v375_v46 = vmax.f32 %v373_v31, %v374_v38  ;;  %v324_v47 = vrot.slane %v296_v39, 4  ;;  %v683_v48 = vpop.f32.mrb[12].mxu0 }
 0x143   :  { %v467_v49 = vunpack.c.l.b16 %v428_v40  ;;  %v399_v50 = vmax.f32 %v323_v41, %v371_v23  ;;  %v382_v51 = vrot.slane %v381_v42, 1  ;;  %v331_v52 = vmax.f32 %v297_v35, %v330_v43  ;;  %v276_v53 = vpop.f32.mrb[13].mxu0 }
 0x144   :  { %v466_v54 = vunpack.c.l.b16 %v427_v44  ;;  %v398_v55 = vmax.f32 %v317_v45, %v365_v29  ;;  %v376_v56 = vrot.slane %v375_v46, 1  ;;  %v325_v57 = vmax.f32 %v296_v39, %v324_v47  ;;  %v684_v58 = vpop.f32.mrb[14].mxu0 }
 0x145   :  { %v474_v59 = vrot.slane %v467_v49, 7  ;;  %v414_v60 = vadd.f32 %v938_v7, %v399_v50  ;;  %v383_v61 = vmax.f32 %v381_v42, %v382_v51  ;;  %v332_v62 = vrot.slane %v331_v52, 2  ;;  %v279_v63 = vpop.f32.mrb[15].mxu0 }
 0x146   :  { %v413_v0 = vadd.f32 %v938_v7, %v398_v55  ;;  %v377_v1 = vmax.f32 %v375_v46, %v376_v56  ;;  %v326_v2 = vrot.slane %v325_v57, 2  ;;  %v390_v3 = vrot.slane %v683_v48, 4 }
 0x147   :  { %v476_v4 = vsel %vm475_vm1, %v474_v59, %v466_v54  ;;  %v422_v5 = vmax.f32 %v414_v60, 0.0  ;;  %v333_v6 = vmax.f32 %v331_v52, %v332_v62  ;;  %v384_v8 = vrot.slane %v276_v53, 4 }
 0x148   :  { %v421_v9 = vmax.f32 %v413_v0, 0.0  ;;  %v327_v10 = vmax.f32 %v325_v57, %v326_v2  ;;  %v391_v11 = vmax.f32 %v683_v48, %v390_v3  ;;  %v299_v12 = vadd.f32 %v684_v58, %v929_v26 }
 0x149   :  { %v430_v13 = vpack.c.bf16 %v422_v5, %v422_v5  ;;  %v334_v14 = vrot.slane %v333_v6, 1  ;;  %v385_v15 = vmax.f32 %v276_v53, %v384_v8  ;;  %v298_v16 = vadd.f32 %v929_v26, %v279_v63 }
 0x14a   :  { %v429_v17 = vpack.c.bf16 %v421_v9, %v421_v9  ;;  %v328_v18 = vrot.slane %v327_v10, 1  ;;  %v392_v19 = vrot.slane %v391_v11, 2  ;;  %v342_v20 = vrot.slane %v299_v12, 4 }
 0x14b   :  { %v469_v21 = vunpack.c.l.b16 %v430_v13  ;;  %v335_v22 = vmax.f32 %v333_v6, %v334_v14  ;;  %v386_v23 = vrot.slane %v385_v15, 2  ;;  %v336_v24 = vrot.slane %v298_v16, 4 }
 0x14c   :  { %v468_v25 = vunpack.c.l.b16 %v429_v17  ;;  %v329_v27 = vmax.f32 %v327_v10, %v328_v18  ;;  %v393_v28 = vmax.f32 %v391_v11, %v392_v19  ;;  %v343_v29 = vmax.f32 %v299_v12, %v342_v20 }
 0x14d   :  { %v401_v30 = vmax.f32 %v335_v22, %v383_v61  ;;  %v387_v31 = vmax.f32 %v385_v15, %v386_v23  ;;  %v337_v32 = vmax.f32 %v298_v16, %v336_v24  ;;  %v480_v26 = vrot.slane %v469_v21, 5 }
 0x14e   :  { %v477_v33 = vrot.slane %v468_v25, 6  ;;  %v400_v34 = vmax.f32 %v329_v27, %v377_v1  ;;  %v344_v35 = vrot.slane %v343_v29, 2  ;;  %v394_v39 = vrot.slane %v393_v28, 1 }
 0x14f   :  { %v416_v36 = vadd.f32 %v938_v7, %v401_v30  ;;  %v338_v37 = vrot.slane %v337_v32, 2  ;;  %v388_v43 = vrot.slane %v387_v31, 1 }
 0x150   :  { %v415_v38 = vadd.f32 %v938_v7, %v400_v34  ;;  %v345_v40 = vmax.f32 %v343_v29, %v344_v35  ;;  %v479_v41 = vsel %vm478_vm2, %v477_v33, %v476_v4  ;;  %v395_v51 = vmax.f32 %v393_v28, %v394_v39 }
 0x151   :  { %v424_v42 = vmax.f32 %v416_v36, 0.0  ;;  %v339_v44 = vmax.f32 %v337_v32, %v338_v37  ;;  %v482_v45 = vsel %vm481_vm3, %v480_v26, %v479_v41  ;;  %v389_v54 = vmax.f32 %v387_v31, %v388_v43 }
 0x152   :  { %v423_v46 = vmax.f32 %v415_v38, 0.0  ;;  %v346_v47 = vrot.slane %v345_v40, 1 }
 0x153   :  { %v432_v48 = vpack.c.bf16 %v424_v42, %v424_v42  ;;  %v340_v49 = vrot.slane %v339_v44, 1 }
 0x154   :  { %v431_v50 = vpack.c.bf16 %v423_v46, %v423_v46  ;;  %v347_v52 = vmax.f32 %v345_v40, %v346_v47 }
 0x155   :  { %v471_v53 = vunpack.c.l.b16 %v432_v48  ;;  %v341_v55 = vmax.f32 %v339_v44, %v340_v49 }
 0x156   :  { %v470_v56 = vunpack.c.l.b16 %v431_v50  ;;  %v403_v57 = vmax.f32 %v347_v52, %v395_v51 }
 0x157   :  { %v402_v58 = vmax.f32 %v341_v55, %v389_v54  ;;  %v486_v61 = vrot.slane %v471_v53, 3 }
 0x158   :  { %v483_v59 = vrot.slane %v470_v56, 4  ;;  %v418_v60 = vadd.f32 %v938_v7, %v403_v57 }
 0x159   :  { %v417_v62 = vadd.f32 %v938_v7, %v402_v58  ;;  %v619_v7 = vld [vmem:[%s973_s5] ss:$0 sm:$0xff] }
 0x15a   :  { %v426_v63 = vmax.f32 %v418_v60, 0.0  ;;  %v485_v0 = vsel %vm484_vm4, %v483_v59, %v482_v45 }
 0x15b   :  { %v425_v1 = vmax.f32 %v417_v62, 0.0  ;;  %v488_v2 = vsel %vm487_vm5, %v486_v61, %v485_v0 }
 0x15c   :  { %v434_v3 = vpack.c.bf16 %v426_v63, %v426_v63 }
 0x15d   :  { %v433_v4 = vpack.c.bf16 %v425_v1, %v425_v1 }
 0x15e   :  { %v473_v5 = vunpack.c.l.b16 %v434_v3 }
 0x15f   :  { %v472_v6 = vunpack.c.l.b16 %v433_v4 }
 0x160   :  { %v492_v9 = vrot.slane %v473_v5, 1 }
 0x161   :  { %v489_v8 = vrot.slane %v472_v6, 2 }
 0x163   :  { %v491_v10 = vsel %vm490_vm6, %v489_v8, %v488_v2 }
 0x164   :  { %v494_v11 = vsel %vm493_vm7, %v492_v9, %v491_v10 }
 0x165   :  { %v495_v12 = vpack.c.b16 %v494_v11, %v494_v11 }
 0x167   :  { %702 = vmatmul.mubr.bf16.vlgmr.msra.gmra.mrb[0].mxu1 %v495_v12 }
 0x23a   :  { %v579_v13 = vpop.f32.mrb[0].mxu1 }
 0x23b   :  { %v580_v14 = vadd.f32 %v619_v7, %v579_v13  ;;  %v703_v15 = vpop.f32.mrb[1].mxu1 }
 0x23c   :  { %v582_v16 = vpop.f32.mrb[2].mxu1 }
 0x23d   :  { %585 = vst [vmem:[#allocation8] sm:$0xff] %v580_v14  ;;  %v704_v17 = vpop.f32.mrb[3].mxu1 }
 0x23e   :  { %814 = shalt.err (!%p811_p0)
}
 0x23f   :  { %s815_s5 = scalar_lea.hbm %s974_s6, 128 }
 0x240   :  { %p816_p1 = scmp.ne.s32.totalorder %s974_s6, %s815_s5  ;;  %p819_p2 = scmp.lt.u32.totalorder %s815_s5, %s974_s6 }
 0x242   :  { %p821_p3 = pnand %p819_p2, %p816_p1 }
 0x244   :  { %824 = shalt.err (!%p821_p3)
}
 0x245   :  { %595 = dma.vmem_to_hbm [thread:$0]  %s593_s13, 128, %s974_s6, [#allocation4]  }
 0x246   :  { %829 = dma.done.wait [#allocation4], 128  }
 0x247   :  { %830 = vsyncadd [#allocation4], 4294967168 }
 0x248   :  { %599 = vsyncpa [#allocation3], 1 }
 0x249   :  { %600 = vsyncpa [#allocation6], 1 }
 0x24a   :  { %601 = vsyncpa [#allocation4], 1 }

</bundles_post_ra>
